<compile_context>
chip_gen: v7x
topology: tpu7x:2x2x1
jax: 0.10.0
libtpu: 0.0.40
codegen_flags: <defaults>
</compile_context>

<pallas_src>
import jax
import jax.numpy as jnp
from jax.experimental import pallas as pl
from jax.experimental.pallas import tpu as pltpu

INPUT_SIZE = 11
PACK = 8                      # samples packed per sublane row (8 * 16 = 128 lanes)
_VMEM_CAP_BYTES = 44 * 1024 * 1024


def _round_up(x, m):
    return ((x + m - 1) // m) * m


def _vmem_estimate(tbr):
    # Conservative: f32 x block (128-lane padded) double-buffered, f32 out
    # block double-buffered, plus the f32/bf16 intermediates (h1, h2, casts)
    # Mosaic materializes, plus the tiny resident weights.
    return tbr * 128 * 4 * 9 + (1 << 20)


def mlp_kernel(x_ref, w1_ref, w2_ref, w3_ref, b_ref, o_ref):
    # x_ref: (tbr, 88) f32 -- 8 samples per sublane row, 11 features each.
    x = x_ref[...].astype(jnp.bfloat16)
    b = b_ref[...]                                               # (3, 128) f32

    # fc1 + ReLU  (bf16 MXU operands, f32 accumulation)
    h1 = jnp.dot(x, w1_ref[...], preferred_element_type=jnp.float32)   # (tbr, 128)
    h1 = jnp.maximum(h1 + b[0:1, :], 0.0)

    # fc2 + ReLU  (bf16-in / f32-accumulate, per review)
    h2 = jnp.dot(h1.astype(jnp.bfloat16), w2_ref[...],
                 preferred_element_type=jnp.float32)                   # (tbr, 64)
    h2 = jnp.maximum(h2 + b[1:2, :h2.shape[1]], 0.0)

    # fc3 + Sigmoid  -> one lane per packed sample
    z = jnp.dot(h2.astype(jnp.bfloat16), w3_ref[...],
                preferred_element_type=jnp.float32)                    # (tbr, 8)
    o_ref[...] = jax.nn.sigmoid(z + b[2:3, :z.shape[1]]).astype(o_ref.dtype)


def simple_nn_forward(x, packed_params, *, max_tile_rows=8192):
    """x: (B, 11) float32.  Returns (B, 1) float32."""
    w1b, w2b, w3b, bias = packed_params
    B, F = x.shape
    kin = w1b.shape[0]            # 88  = PACK * 11
    n_h1 = w1b.shape[1]           # 128 = PACK * 16
    n_h2 = w2b.shape[1]           # 64  = PACK * 8
    n_out = w3b.shape[1]          # 8   = PACK

    # Pad the batch to a multiple of PACK (tiny copy, only if B % 8 != 0),
    # then take the FREE row-major view (B/8, 88): no transpose / cast / pad
    # staging pass through HBM.
    Bp = _round_up(B, PACK)
    if Bp != B:
        x = jnp.pad(x, ((0, Bp - B), (0, 0)))
    xr = x.reshape(Bp // PACK, PACK * F)          # (R, 88), bitcast-only
    R = xr.shape[0]

    # Batch tile (in packed rows): as large as VMEM allows.
    tbr = min(_round_up(max_tile_rows, 8), _round_up(R, 8))
    while _vmem_estimate(tbr) > _VMEM_CAP_BYTES and tbr > 8:
        tbr = _round_up(max(tbr // 2, 8), 8)
    if tbr >= R:
        tbr = R
        if R > 2048:
            # keep >= 2 grid steps so ("parallel",) can use both v7x cores
            tbr = _round_up(pl.cdiv(R, 2), 8)
    grid = (pl.cdiv(R, tbr),)

    vmem_limit = int(min(48 * 2**20,
                         max(32 * 2**20, _vmem_estimate(tbr) + 4 * 2**20)))

    out = pl.pallas_call(
        mlp_kernel,
        out_shape=jax.ShapeDtypeStruct((R, n_out), jnp.float32),
        grid_spec=pltpu.PrefetchScalarGridSpec(
            num_scalar_prefetch=0,
            grid=grid,
            in_specs=[
                # streamed activations: tiled along the packed-row axis
                pl.BlockSpec((tbr, kin), lambda i: (i, 0)),
                # weights / biases: single block, resident across the grid
                pl.BlockSpec((kin, n_h1), lambda i: (0, 0)),
                pl.BlockSpec((n_h1, n_h2), lambda i: (0, 0)),
                pl.BlockSpec((n_h2, n_out), lambda i: (0, 0)),
                pl.BlockSpec((3, n_h1), lambda i: (0, 0)),
            ],
            out_specs=pl.BlockSpec((tbr, n_out), lambda i: (i, 0)),
        ),
        compiler_params=pltpu.CompilerParams(
            dimension_semantics=("parallel",),
            vmem_limit_bytes=vmem_limit,
        ),
    )(xr, w1b, w2b, w3b, bias)

    return out.reshape(-1)[:B].reshape(B, 1)


# ----------------------------- parameters ----------------------------------

def init_params(key, input_size=INPUT_SIZE):
    """PyTorch nn.Linear-style init: W (out, in), b (out,), U(-1/sqrt(in), +)."""
    ks = jax.random.split(key, 6)

    def linear(kw, kb, fan_in, fan_out):
        bound = 1.0 / jnp.sqrt(fan_in)
        w = jax.random.uniform(kw, (fan_out, fan_in), jnp.float32, -bound, bound)
        b = jax.random.uniform(kb, (fan_out,), jnp.float32, -bound, bound)
        return w, b

    w1, b1 = linear(ks[0], ks[1], input_size, 16)
    w2, b2 = linear(ks[2], ks[3], 16, 8)
    w3, b3 = linear(ks[4], ks[5], 8, 1)
    return (w1, b1, w2, b2, w3, b3)


def _block_diag(w, reps):
    i, o = w.shape
    out = jnp.zeros((reps * i, reps * o), w.dtype)
    for j in range(reps):
        out = out.at[j * i:(j + 1) * i, j * o:(j + 1) * o].set(w)
    return out


def pack_params(params, dtype=jnp.bfloat16):
    """One-time prep: block-diagonal bf16 weights (8 samples / row) + folded biases."""
    w1, b1, w2, b2, w3, b3 = params
    w1b = _block_diag(w1.T, PACK).astype(dtype)        # (88, 128)
    w2b = _block_diag(w2.T, PACK).astype(dtype)        # (128, 64)
    w3b = _block_diag(w3.T, PACK).astype(dtype)        # (64, 8)
    bias = jnp.zeros((3, PACK * 16), jnp.float32)      # (3, 128) f32
    bias = bias.at[0, :PACK * 16].set(jnp.tile(b1, PACK))
    bias = bias.at[1, :PACK * 8].set(jnp.tile(b2, PACK))
    bias = bias.at[2, :PACK * 1].set(jnp.tile(b3, PACK))
    return (w1b, w2b, w3b, bias)


def reference_forward(x, params):
    """Pure-JAX reference mirroring the kernel numerics (bf16 in, f32 accumulate)."""
    w1, b1, w2, b2, w3, b3 = params

    def lin(a, w, b):
        return jnp.dot(a.astype(jnp.bfloat16), w.astype(jnp.bfloat16).T,
                       preferred_element_type=jnp.float32) + b

    h1 = jnp.maximum(lin(x, w1, b1), 0.0)
    h2 = jnp.maximum(lin(h1, w2, b2), 0.0)
    return jax.nn.sigmoid(lin(h2, w3, b3))             # (B, 1)


# ------------------------------- demo ---------------------------------------

if __name__ == "__main__":
    key = jax.random.PRNGKey(0)
    k_params, k_x1, k_x2 = jax.random.split(key, 3)
    params = init_params(k_params, INPUT_SIZE)
    packed = pack_params(params)

    # Small test: B=64 -> 8 packed rows, single grid step.
    x1 = jax.random.normal(k_x1, (64, INPUT_SIZE), jnp.float32)
    out1 = jax.block_until_ready(simple_nn_forward(x1, packed))
    ref1 = reference_forward(x1, params)
    assert out1.shape == (64, 1)
    assert jnp.allclose(out1, ref1, atol=2e-3, rtol=2e-3), float(
        jnp.max(jnp.abs(out1 - ref1)))

    # Multi-step test: B=300 -> pad to 304 -> 38 rows; 16-row tiles -> 3 grid
    # steps with a ragged last block (exercises resident weights + masking).
    x2 = jax.random.normal(k_x2, (300, INPUT_SIZE), jnp.float32)
    out2 = jax.block_until_ready(simple_nn_forward(x2, packed, max_tile_rows=16))
    ref2 = reference_forward(x2, params)
    assert out2.shape == (300, 1)
    assert jnp.allclose(out2, ref2, atol=2e-3, rtol=2e-3), float(
        jnp.max(jnp.abs(out2 - ref2)))

    print("KERNEL_OK")
</pallas_src>

<mosaic_0001>
module attributes {stable_mosaic.version = 11 : i64} {
  func.func @mlp_kernel(%arg0: i32, %arg1: memref<8x88xf32, #tpu.memory_space<vmem>>, %arg2: memref<88x128xbf16, #tpu.memory_space<vmem>>, %arg3: memref<128x64xbf16, #tpu.memory_space<vmem>>, %arg4: memref<64x8xbf16, #tpu.memory_space<vmem>>, %arg5: memref<3x128xf32, #tpu.memory_space<vmem>>, %arg6: memref<8x8xf32, #tpu.memory_space<vmem>>) attributes {dimension_semantics = [#tpu.dimension_semantics<parallel>], iteration_bounds = array<i64: 1>, scalar_prefetch = 0 : i64, scratch_operands = 0 : i64, tpu.core_type = #tpu.core_type<tc>, window_params = [{transform_indices = @transform_0, window_bounds = array<i64: 8, 88>}, {pipeline_mode = #tpu.pipeline_mode<synchronous>, transform_indices = @transform_1, window_bounds = array<i64: 88, 128>}, {pipeline_mode = #tpu.pipeline_mode<synchronous>, transform_indices = @transform_2, window_bounds = array<i64: 128, 64>}, {pipeline_mode = #tpu.pipeline_mode<synchronous>, transform_indices = @transform_3, window_bounds = array<i64: 64, 8>}, {pipeline_mode = #tpu.pipeline_mode<synchronous>, transform_indices = @transform_4, window_bounds = array<i64: 3, 128>}, {transform_indices = @transform_5, window_bounds = array<i64: 8, 8>}]} {
    %c0 = arith.constant 0 : index
    %c0_0 = arith.constant 0 : index
    %0 = vector.load %arg1[%c0, %c0_0] : memref<8x88xf32, #tpu.memory_space<vmem>>, vector<8x88xf32>
    %1 = arith.truncf %0 : vector<8x88xf32> to vector<8x88xbf16>
    %c0_1 = arith.constant 0 : index
    %c0_2 = arith.constant 0 : index
    %2 = vector.load %arg5[%c0_1, %c0_2] : memref<3x128xf32, #tpu.memory_space<vmem>>, vector<3x128xf32>
    %c0_3 = arith.constant 0 : index
    %c0_4 = arith.constant 0 : index
    %3 = vector.load %arg2[%c0_3, %c0_4] : memref<88x128xbf16, #tpu.memory_space<vmem>>, vector<88x128xbf16>
    %cst = arith.constant dense<0.000000e+00> : vector<8x128xf32>
    %4 = tpu.matmul %1, %3, %cst {dimension_numbers = #tpu.dot_dimension_numbers<[1], [0], [0], [1], [0, 0, 1, 1], [], []>} : vector<8x88xbf16>, vector<88x128xbf16>, vector<8x128xf32> -> vector<8x128xf32>
    %5 = vector.extract_strided_slice %2 {offsets = [0, 0], sizes = [1, 128], strides = [1, 1]} : vector<3x128xf32> to vector<1x128xf32>
    %6 = vector.broadcast %5 : vector<1x128xf32> to vector<8x128xf32>
    %7 = arith.addf %4, %6 : vector<8x128xf32>
    %cst_5 = arith.constant 0.000000e+00 : f32
    %8 = vector.broadcast %cst_5 : f32 to vector<8x128xf32>
    %9 = arith.maximumf %7, %8 : vector<8x128xf32>
    %10 = arith.truncf %9 : vector<8x128xf32> to vector<8x128xbf16>
    %c0_6 = arith.constant 0 : index
    %c0_7 = arith.constant 0 : index
    %11 = vector.load %arg3[%c0_6, %c0_7] : memref<128x64xbf16, #tpu.memory_space<vmem>>, vector<128x64xbf16>
    %cst_8 = arith.constant dense<0.000000e+00> : vector<8x64xf32>
    %12 = tpu.matmul %10, %11, %cst_8 {dimension_numbers = #tpu.dot_dimension_numbers<[1], [0], [0], [1], [0, 0, 1, 1], [], []>} : vector<8x128xbf16>, vector<128x64xbf16>, vector<8x64xf32> -> vector<8x64xf32>
    %13 = vector.extract_strided_slice %2 {offsets = [1, 0], sizes = [1, 64], strides = [1, 1]} : vector<3x128xf32> to vector<1x64xf32>
    %14 = vector.broadcast %13 : vector<1x64xf32> to vector<8x64xf32>
    %15 = arith.addf %12, %14 : vector<8x64xf32>
    %cst_9 = arith.constant 0.000000e+00 : f32
    %16 = vector.broadcast %cst_9 : f32 to vector<8x64xf32>
    %17 = arith.maximumf %15, %16 : vector<8x64xf32>
    %18 = arith.truncf %17 : vector<8x64xf32> to vector<8x64xbf16>
    %c0_10 = arith.constant 0 : index
    %c0_11 = arith.constant 0 : index
    %19 = vector.load %arg4[%c0_10, %c0_11] : memref<64x8xbf16, #tpu.memory_space<vmem>>, vector<64x8xbf16>
    %cst_12 = arith.constant dense<0.000000e+00> : vector<8x8xf32>
    %20 = tpu.matmul %18, %19, %cst_12 {dimension_numbers = #tpu.dot_dimension_numbers<[1], [0], [0], [1], [0, 0, 1, 1], [], []>} : vector<8x64xbf16>, vector<64x8xbf16>, vector<8x8xf32> -> vector<8x8xf32>
    %21 = vector.extract_strided_slice %2 {offsets = [2, 0], sizes = [1, 8], strides = [1, 1]} : vector<3x128xf32> to vector<1x8xf32>
    %22 = vector.broadcast %21 : vector<1x8xf32> to vector<8x8xf32>
    %23 = arith.addf %20, %22 : vector<8x8xf32>
    %24 = arith.negf %23 : vector<8x8xf32>
    %25 = math.exp %24 : vector<8x8xf32>
    %cst_13 = arith.constant 1.000000e+00 : f32
    %26 = vector.broadcast %cst_13 : f32 to vector<8x8xf32>
    %27 = arith.addf %26, %25 : vector<8x8xf32>
    %28 = arith.divf %26, %27 : vector<8x8xf32>
    %c0_14 = arith.constant 0 : index
    %c0_15 = arith.constant 0 : index
    %29 = vector.load %arg6[%c0_14, %c0_15] : memref<8x8xf32, #tpu.memory_space<vmem>>, vector<8x8xf32>
    tpu.vector_store %arg6[%c0_14, %c0_15], %28 {strides = array<i32>} : memref<8x8xf32, #tpu.memory_space<vmem>>, vector<8x8xf32>,
    return
  }
  func.func @transform_0(%arg0: i32) -> (i32, i32) {
    %c0_i32 = arith.constant 0 : i32
    %c0_i32_0 = arith.constant 0 : i32
    return %arg0, %c0_i32 : i32, i32
  }
  func.func @transform_1(%arg0: i32) -> (i32, i32) {
    %c0_i32 = arith.constant 0 : i32
    %c0_i32_0 = arith.constant 0 : i32
    %c0_i32_1 = arith.constant 0 : i32
    return %c0_i32, %c0_i32_0 : i32, i32
  }
  func.func @transform_2(%arg0: i32) -> (i32, i32) {
    %c0_i32 = arith.constant 0 : i32
    %c0_i32_0 = arith.constant 0 : i32
    %c0_i32_1 = arith.constant 0 : i32
    return %c0_i32, %c0_i32_0 : i32, i32
  }
  func.func @transform_3(%arg0: i32) -> (i32, i32) {
    %c0_i32 = arith.constant 0 : i32
    %c0_i32_0 = arith.constant 0 : i32
    %c0_i32_1 = arith.constant 0 : i32
    return %c0_i32, %c0_i32_0 : i32, i32
  }
  func.func @transform_4(%arg0: i32) -> (i32, i32) {
    %c0_i32 = arith.constant 0 : i32
    %c0_i32_0 = arith.constant 0 : i32
    %c0_i32_1 = arith.constant 0 : i32
    return %c0_i32, %c0_i32_0 : i32, i32
  }
  func.func @transform_5(%arg0: i32) -> (i32, i32) {
    %c0_i32 = arith.constant 0 : i32
    %c0_i32_0 = arith.constant 0 : i32
    return %arg0, %c0_i32 : i32, i32
  }
}

</mosaic_0001>

<bundles_post_ra>
// kernel: tpu_custom_call.1
= control target key start
LH: loop header
LB: loop body
LE: loop exit
PB: predicated region body
PF: predicated region fallthrough
CT: control target
= control target key end

     0   :  { %v474_v1 = vmov 0.0   ;;  %vm475_vm0 = vmmov 0   ;;  %vm77_vm1 = vcmask 1043456   ;;  %s603_s0 = inlined_call_operand.vmem [shape: f32[8,88], index: 0, kind: input, shape index: {}]   ;;  %s604_s1 = inlined_call_operand.vmem [shape: bf16[88,128], index: 1, kind: input, shape index: {}]   ;;  %s605_s2 = inlined_call_operand.vmem [shape: bf16[128,64], index: 2, kind: input, shape index: {}]   ;;  %s606_s3 = inlined_call_operand.vmem [shape: bf16[64,8], index: 3, kind: input, shape index: {}]   ;;  %s607_s4 = inlined_call_operand.vmem [shape: f32[3,128], index: 4, kind: input, shape index: {}]   ;;  %s608_s5 = inlined_call_operand.hbm [shape: f32[8,8], index: 5, kind: output, shape index: {}]  }
   0x1   :  { %v428_v0 = vld [vmem:[%s604_s1] sm:$0xff]   ;;  %377 = vmatprep.subr.bf16.mxu0 %v474_v1  ;;  %393 = vmatprep.subr.bf16.mxu1 %v474_v1  ;;  %v429_v2 = vld [vmem:[%s604_s1 + $0x8] sm:$0xff]   ;;  %v430_v3 = vld [vmem:[%s604_s1 + $0x10] sm:$0xff]  }
   0x2   :  { %378 = vmatpush3.bf16.msra.mxu0 %v428_v0  ;;  %389 = vmatprep.mubr.msk.bf16.mxu0 %vm475_vm0, %v474_v1  ;;  %v434_v4 = vld [vmem:[%s605_s2] sm:$0xff]   ;;  %v435_v5 = vld [vmem:[%s605_s2 + $0x8] sm:$0xff]   ;;  %v431_v6 = vld [vmem:[%s604_s1 + $0x18] sm:$0xff]  }
   0x3   :  { %379 = vmatprep.subr.bf16.mxu0 %v474_v1  ;;  %409 = vmatprep.mubr.msk.bf16.mxu1 %vm475_vm0, %v474_v1  ;;  %v432_v7 = vld [vmem:[%s604_s1 + $0x20] sm:$0xff]   ;;  %v436_v8 = vld [vmem:[%s605_s2 + $0x10] sm:$0xff]   ;;  %v433_v9 = vld [vmem:[%s604_s1 + $0x28] ss:$0 sps:$4 sm:$0xff]  }
   0x4   :  { %394 = vmatpush3.bf16.msra.mxu1 %v434_v4  ;;  %v437_v10 = vld [vmem:[%s605_s2 + $0x18] sm:$0xff]  }
   0x5   :  { %395 = vmatprep.subr.bf16.mxu1 %v474_v1 }
   0x6   :  { %380 = vmatpush3.bf16.msra.mxu0 %v429_v2 }
   0x7   :  { %381 = vmatprep.subr.bf16.mxu0 %v474_v1 }
   0x8   :  { %396 = vmatpush3.bf16.msra.mxu1 %v435_v5 }
   0x9   :  { %397 = vmatprep.subr.bf16.mxu1 %v474_v1 }
   0xa   :  { %382 = vmatpush3.bf16.msra.mxu0 %v430_v3 }
   0xb   :  { %383 = vmatprep.subr.bf16.mxu0 %v474_v1 }
   0xc   :  { %398 = vmatpush3.bf16.msra.mxu1 %v436_v8 }
   0xe   :  { %384 = vmatpush3.bf16.msra.mxu0 %v431_v6 }
   0xf   :  { %385 = vmatprep.subr.bf16.mxu0 %v474_v1 }
  0x10   :  { %10 = vsyncpa [#allocation3], 0  ;;  %399 = vmatprep.subr.bf16.mxu1 %v474_v1  ;;  %v22_v11 = vld [vmem:[%s603_s0] sm:$0xff]  ;;  %v79_v12 = vsel %vm77_vm1, %v433_v9, 0  ;;  %vm73_vm2 = vcmask 719872   ;;  %v439_v15 = vld [vmem:[%s605_s2 + $0x28] sm:$0xff]   ;;  %v36_v20 = vlaneseq }
  0x11   :  { %400 = vmatpush3.bf16.msra.mxu1 %v437_v10  ;;  %v438_v13 = vld [vmem:[%s605_s2 + $0x20] sm:$0xff]   ;;  %v23_v14 = vpack.c.bf16 %v22_v11, %v22_v11  ;;  %v440_v16 = vld [vmem:[%s605_s2 + $0x30] sm:$0xff]   ;;  %v441_v17 = vld [vmem:[%s605_s2 + $0x38] sm:$0xff]   ;;  %vm269_vm3 = vcmask 523264   ;;  %vm319_vm4 = vcmask 64512  }
  0x12   :  { %386 = vmatpush3.bf16.msra.mxu0 %v432_v7  ;;  %401 = vmatprep.subr.bf16.mxu1 %v474_v1  ;;  %v442_v18 = vld [vmem:[%s606_s3] sm:$0xff]   ;;  %v443_v19 = vld [vmem:[%s606_s3 + $0x8] sm:$0xff]   ;;  %v37_v21 = vshrl.u32 %v36_v20, 7  ;;  %v444_v32 = vld [vmem:[%s606_s3 + $0x10] sm:$0xff]  }
  0x13   :  { %387 = vmatprep.subr.bf16.mxu0 %v474_v1  ;;  %v24_v23 = vld [vmem:[%s607_s4] sm:$0x7]  ;;  %v445_v33 = vld [vmem:[%s606_s3 + $0x18] sm:$0xff]   ;;  %s476_s3 = smov [#allocation2]  }
  0x14   :  { %v38_v22 = vsub.s32 0, %v37_v21  ;;  %v141_v34 = vsub.s32 1, %v37_v21  ;;  %v243_v43 = vsub.s32 2, %v37_v21  ;;  %s327_s4 = sshll.u32 %s476_s3, 4  ;;  %s328_s4 = int_to_ptr.vmem [resolvable:$true] %s327_s4 }
  0x15   :  { %402 = vmatpush3.bf16.msra.mxu1 %v438_v13  ;;  %s450_s30 = scalar_lea.vmem %s328_s4, 128  ;;  %p455_p1 = scmp.lt.s32.totalorder %s328_s4, %s328_s4 }
  0x16   :  { %388 = vmatpush3.bf16.msra.mxu0 %v79_v12  ;;  %403 = vmatprep.subr.bf16.mxu1 %v474_v1  ;;  %v39_v24 = vrot.slane %v24_v23, %v38_v22  ;;  %v142_v35 = vrot.slane %v24_v23, %v141_v34  ;;  %v244_v44 = vrot.slane %v24_v23, %v243_v43  ;;  %p451_p0 = scmp.ne.s32.totalorder %s328_s4, %s450_s30  ;;  %p456_p2 = scmp.lt.s32.totalorder %s450_s30, %s450_s30 }
  0x17   :  { %413 = vmatprep.subr.bf16.mxu0 %v474_v1 }
  0x18   :  { %p457_p3 = por %p456_p2, %p455_p1 }
  0x19   :  { %390 = vmatmul.mubr.msk.bf16.vlgmr.msra.gmra.mrb[0].mxu0 %vm73_vm2, %v23_v14  ;;  %404 = vmatpush3.bf16.msra.mxu1 %v439_v15 }
  0x1a   :  { %421 = vmatprep.mubr.msk.bf16.mxu0 %vm475_vm0, %v474_v1  ;;  %405 = vmatprep.subr.bf16.mxu1 %v474_v1  ;;  %p458_p4 = pnand %p457_p3, %p451_p0 }
  0x1b   :  { %414 = vmatpush3.bf16.msra.mxu0 %v442_v18 }
  0x1c   :  { %415 = vmatprep.subr.bf16.mxu0 %v474_v1 }
  0x1d   :  { %406 = vmatpush3.bf16.msra.mxu1 %v440_v16 }
  0x1e   :  { %407 = vmatprep.subr.bf16.mxu1 %v474_v1 }
  0x1f   :  { %416 = vmatpush3.bf16.msra.mxu0 %v443_v19 }
  0x20   :  { %417 = vmatprep.subr.bf16.mxu0 %v474_v1 }
  0x21   :  { %408 = vmatpush3.bf16.msra.mxu1 %v441_v17 }
  0x23   :  { %418 = vmatpush3.bf16.msra.mxu0 %v444_v32 }
  0x24   :  { %419 = vmatprep.subr.bf16.mxu0 %v474_v1 }
  0x27   :  { %420 = vmatpush3.bf16.msra.mxu0 %v445_v33 }
  0xec   :  { %v115_v25 = vpop.f32.mrb[0].mxu0 }
  0xed   :  { %v116_v26 = vadd.f32 %v115_v25, %v39_v24  ;;  %v391_v27 = vpop.f32.mrb[1].mxu0 }
  0xee   :  { %v118_v28 = vpop.f32.mrb[2].mxu0 }
  0xef   :  { %v121_v29 = vmax.f32 %v116_v26, 0.0  ;;  %v392_v30 = vpop.f32.mrb[3].mxu0 }
  0xf1   :  { %v122_v31 = vpack.c.bf16 %v121_v29, %v121_v29 }
  0xf3   :  { %410 = vmatmul.mubr.bf16.vlgmr.msra.gmra.mrb[0].mxu1 %v122_v31 }
 0x1c6   :  { %v225_v36 = vpop.f32.mrb[0].mxu1 }
 0x1c7   :  { %v226_v37 = vadd.f32 %v225_v36, %v142_v35  ;;  %v411_v38 = vpop.f32.mrb[1].mxu1 }
 0x1c8   :  { %v228_v39 = vpop.f32.mrb[2].mxu1 }
 0x1c9   :  { %v231_v40 = vmax.f32 %v226_v37, 0.0  ;;  %v412_v41 = vpop.f32.mrb[3].mxu1 }
 0x1cb   :  { %v232_v42 = vpack.c.bf16 %v231_v40, %v231_v40 }
 0x1cd   :  { %422 = vmatmul.mubr.msk.bf16.vlgmr.msra.gmra.mrb[4].mxu0 %vm269_vm3, %v232_v42 }
 0x2a0   :  { %v307_v45 = vpop.f32.mrb[4].mxu0 }
 0x2a1   :  { %v308_v46 = vadd.f32 %v307_v45, %v244_v44  ;;  %v423_v47 = vpop.f32.mrb[5].mxu0 }
 0x2a2   :  { %v310_v48 = vpop.f32.mrb[6].mxu0 }
 0x2a3   :  { %v355_v49 = vmul.f32 -1.442695, %v308_v46  ;;  %v424_v50 = vpop.f32.mrb[7].mxu0 }
 0x2a5   :  { %446 = vpow2.f32 %v355_v49 }
 0x2af   :  { %v447_v51 = vpop.eup %446 }
 0x2b0   :  { %v316_v52 = vadd.f32 1.0, %v447_v51 }
 0x2b2   :  { %448 = vrcp.f32 %v316_v52 }
 0x2bc   :  { %v449_v53 = vpop.eup %448 }
 0x2bd   :  { %320 = vst.msk [vmem:[#allocation2] sm:$0xff] %vm319_vm4, %v449_v53 }
 0x2be   :  { %461 = shalt.err (!%p458_p4)
}
 0x2bf   :  { %s462_s8 = scalar_lea.hbm %s608_s5, 128 }
 0x2c0   :  { %p463_p5 = scmp.ne.s32.totalorder %s608_s5, %s462_s8  ;;  %p466_p6 = scmp.lt.u32.totalorder %s462_s8, %s608_s5 }
 0x2c2   :  { %p468_p7 = pnand %p466_p6, %p463_p5 }
 0x2c4   :  { %471 = shalt.err (!%p468_p7)
}
 0x2c5   :  { %330 = dma.vmem_to_hbm [thread:$0]  %s328_s4, 128, %s608_s5, [#allocation3]  }
 0x2c6   :  { %472 = dma.done.wait [#allocation3], 128  }
 0x2c7   :  { %473 = vsyncadd [#allocation3], 4294967168 }
 0x2c8   :  { %334 = vsyncpa [#allocation3], 1 }

</bundles_post_ra>
